<compile_context>
chip_gen: v7x
topology: tpu7x:2x2x1
jax: 0.10.0
libtpu: 0.0.40
codegen_flags: <defaults>
</compile_context>

<pallas_src>
import jax
import jax.numpy as jnp
from jax.experimental import pallas as pl
from jax.experimental.pallas import tpu as pltpu


def _round_up(v, m):
    return ((v + m - 1) // m) * m


# ----------------------------- MADE masks (glue) -----------------------------
def get_mask(in_features, out_features, in_flow_features, mask_type=None):
    if mask_type == 'input':
        in_degrees = jnp.arange(in_features) % in_flow_features
    else:
        in_degrees = jnp.arange(in_features) % (in_flow_features - 1)
    if mask_type == 'output':
        # note: torch's `arange(out) % n - 1` == (arange(out) % n) - 1
        out_degrees = (jnp.arange(out_features) % in_flow_features) - 1
    else:
        out_degrees = jnp.arange(out_features) % (in_flow_features - 1)
    # (out_features, in_features) — matches nn.Linear weight layout
    return (out_degrees[:, None] >= in_degrees[None, :]).astype(jnp.float32)


# ------------------------------- Pallas kernel -------------------------------
def _made_split_fused_kernel(xc_ref, w1_ref, b1_ref, w2_ref, b2_ref,
                             w3_ref, b3_ref, u_ref, ld_ref):
    d = u_ref.shape[0]                 # num_inputs
    two_h = w2_ref.shape[0]            # 2 * num_hidden  (s-half | t-half)
    h = two_h // 2
    cdt = w1_ref.dtype                 # MXU operand dtype (f32 or bf16)

    xc = xc_ref[...]                                         # (DCp, TB) f32
    # tanh on the s-half rows, relu on the t-half rows (single column mask).
    is_s = jax.lax.broadcasted_iota(jnp.int32, (two_h, 1), 0) < h

    z = jnp.dot(w1_ref[...], xc.astype(cdt),
                preferred_element_type=jnp.float32) + b1_ref[...]
    z = jnp.where(is_s, jnp.tanh(z), jnp.maximum(z, 0.0))
    z = jnp.dot(w2_ref[...], z.astype(cdt),
                preferred_element_type=jnp.float32) + b2_ref[...]
    z = jnp.where(is_s, jnp.tanh(z), jnp.maximum(z, 0.0))
    ma = jnp.dot(w3_ref[...], z.astype(cdt),
                 preferred_element_type=jnp.float32) + b3_ref[...]  # (2D, TB)

    x = xc[:d, :]                      # x occupies the first D feature rows
    m = ma[:d, :]
    a = ma[d:, :]
    u_ref[...] = (x - m) * jnp.exp(-a)                        # lane-dense
    ld_ref[...] = -jnp.sum(a, axis=0, keepdims=True)          # (1, TB) lane-dense


# ----------------------------- wrapper / params ------------------------------
def init_params(key, num_inputs, num_hidden, num_cond_inputs):
    """Returns (fused_params_for_kernel, raw_per_branch_params_for_reference)."""
    D, H, C = num_inputs, num_hidden, num_cond_inputs
    mask_in = get_mask(D, H, D, mask_type='input')     # (H, D)
    mask_hid = get_mask(H, H, D)                       # (H, H)
    mask_out = get_mask(H, D, D, mask_type='output')   # (D, H)

    def linear(k, out_f, in_f, bias=True):
        k1, k2 = jax.random.split(k)
        bound = 1.0 / float(in_f) ** 0.5
        w = jax.random.uniform(k1, (out_f, in_f), jnp.float32, -bound, bound)
        b = (jax.random.uniform(k2, (out_f,), jnp.float32, -bound, bound)
             if bias else jnp.zeros((out_f,), jnp.float32))
        return w, b

    keys = jax.random.split(key, 8)
    raw = {}
    for name, kset in (("s", keys[:4]), ("t", keys[4:])):
        k_join, k_cond, k_hid, k_out = kset
        w_in, b_in = linear(k_join, H, D)
        w_c, _ = linear(k_cond, H, C, bias=False)      # cond_linear: no bias
        w_h, b_h = linear(k_hid, H, H)
        w_o, b_o = linear(k_out, D, H)
        raw[name] = dict(w_in=w_in * mask_in, b_in=b_in, w_c=w_c,
                         w_h=w_h * mask_hid, b_h=b_h,
                         w_o=w_o * mask_out, b_o=b_o)

    s, t = raw["s"], raw["t"]
    zHH = jnp.zeros((H, H), jnp.float32)
    zDH = jnp.zeros((D, H), jnp.float32)
    # Layer 1 (joiner, cond folded in): [x | c] -> [s_hidden | t_hidden]
    w1 = jnp.concatenate([jnp.concatenate([s["w_in"], s["w_c"]], axis=1),
                          jnp.concatenate([t["w_in"], t["w_c"]], axis=1)], axis=0)
    b1 = jnp.concatenate([s["b_in"], t["b_in"]])[:, None]          # (2H, 1)
    # Layer 2: block-diagonal hidden -> hidden
    w2 = jnp.concatenate([jnp.concatenate([s["w_h"], zHH], axis=1),
                          jnp.concatenate([zHH, t["w_h"]], axis=1)], axis=0)
    b2 = jnp.concatenate([s["b_h"], t["b_h"]])[:, None]            # (2H, 1)
    # Layer 3: block-diagonal hidden -> [m | a]
    w3 = jnp.concatenate([jnp.concatenate([s["w_o"], zDH], axis=1),
                          jnp.concatenate([zDH, t["w_o"]], axis=1)], axis=0)
    b3 = jnp.concatenate([s["b_o"], t["b_o"]])[:, None]            # (2D, 1)

    fused = (w1, b1, w2, b2, w3, b3)
    return fused, raw


def made_split_direct(x, cond, fused_params, *, block_batch=2048,
                      mxu_dtype=jnp.bfloat16):
    w1, b1, w2, b2, w3, b3 = fused_params
    B, D = x.shape
    C = cond.shape[1]
    two_h = w2.shape[0]
    two_d = w3.shape[0]

    # Feature-major input: batch on the lane axis (wrapper-side layout plumbing).
    xc = jnp.concatenate([x, cond], axis=1).T.astype(jnp.float32)   # (D+C, B)

    # Pad the tiny feature axis to a sublane multiple and batch to the tile size.
    dc = D + C
    dcp = _round_up(dc, 8)
    if dcp != dc:
        xc = jnp.pad(xc, ((0, dcp - dc), (0, 0)))
        w1 = jnp.pad(w1, ((0, 0), (0, dcp - dc)))

    tb = _round_up(min(block_batch, _round_up(B, 128)), 128)
    bp = _round_up(B, tb)
    if bp != B:
        xc = jnp.pad(xc, ((0, 0), (0, bp - B)))

    # MXU operands in mxu_dtype (bf16 fast path on v6e/v7x); biases stay f32.
    w1c, w2c, w3c = (w.astype(mxu_dtype) for w in (w1, w2, w3))

    tile = lambda i: (0, i)       # stream batch tiles (double-buffered)
    const = lambda i: (0, 0)      # weights/biases resident across the grid

    nbytes = (4 * bp * (dcp + D + 1)
              + sum(int(a.size) * a.dtype.itemsize
                    for a in (w1c, w2c, w3c, b1, b2, b3)))
    cost = pl.CostEstimate(
        flops=int(2 * bp * (two_h * dcp + two_h * two_h + two_d * two_h)),
        transcendentals=int(bp * (2 * two_h + D)),
        bytes_accessed=int(nbytes),
    )

    u_t, ld = pl.pallas_call(
        _made_split_fused_kernel,
        out_shape=(jax.ShapeDtypeStruct((D, bp), jnp.float32),
                   jax.ShapeDtypeStruct((1, bp), jnp.float32)),
        grid_spec=pltpu.PrefetchScalarGridSpec(
            num_scalar_prefetch=0,
            grid=(bp // tb,),
            in_specs=[
                pl.BlockSpec((dcp, tb), tile),          # [x | c]^T tile
                pl.BlockSpec((two_h, dcp), const),      # W1
                pl.BlockSpec((two_h, 1), const),        # b1
                pl.BlockSpec((two_h, two_h), const),    # W2 (block-diag)
                pl.BlockSpec((two_h, 1), const),        # b2
                pl.BlockSpec((two_d, two_h), const),    # W3 (block-diag)
                pl.BlockSpec((two_d, 1), const),        # b3
            ],
            out_specs=[
                pl.BlockSpec((D, tb), tile),            # u^T
                pl.BlockSpec((1, tb), tile),            # logdet (lane-dense)
            ],
        ),
        compiler_params=pltpu.CompilerParams(
            dimension_semantics=("parallel",),          # 2 TCs on v7x
            vmem_limit_bytes=32 * 1024 * 1024,
        ),
        cost_estimate=cost,
    )(xc, w1c, b1, w2c, b2, w3c, b3)

    u = u_t[:, :B].T            # (B, D)
    logdet = ld[:, :B].T        # (B, 1)
    return u, logdet


# --------------------- pure-JAX reference (PyTorch layout) -------------------
def made_split_ref(x, c, raw):
    def branch(p, act):
        h = act(x @ p["w_in"].T + p["b_in"] + c @ p["w_c"].T)
        h = act(h @ p["w_h"].T + p["b_h"])
        return h @ p["w_o"].T + p["b_o"]
    m = branch(raw["s"], jnp.tanh)
    a = branch(raw["t"], jax.nn.relu)
    u = (x - m) * jnp.exp(-a)
    return u, -jnp.sum(a, axis=-1, keepdims=True)


if __name__ == "__main__":
    num_inputs, num_hidden, num_cond = 8, 32, 4
    batch = 256

    key = jax.random.PRNGKey(0)
    kx, kc, kp = jax.random.split(key, 3)
    x = jax.random.normal(kx, (batch, num_inputs), jnp.float32)
    cond = jax.random.normal(kc, (batch, num_cond), jnp.float32)
    fused, raw = init_params(kp, num_inputs, num_hidden, num_cond)

    u_ref, ld_ref = made_split_ref(x, cond, raw)

    run = jax.jit(made_split_direct, static_argnames=("block_batch", "mxu_dtype"))

    # Exact-math path (f32 MXU operands): proves the fused / transposed layout
    # matches the PyTorch-equivalent reference exactly (multi-step grid: 256/128).
    u32, ld32 = run(x, cond, fused, block_batch=128, mxu_dtype=jnp.float32)
    jax.block_until_ready((u32, ld32))
    assert u32.shape == (batch, num_inputs) and ld32.shape == (batch, 1)
    assert jnp.allclose(u32, u_ref, atol=1e-5, rtol=1e-5)
    assert jnp.allclose(ld32, ld_ref, atol=1e-5, rtol=1e-5)

    # bf16 MXU-operand fast path (v6e/v7x): same semantics with quantized
    # matmul operands, so compare with a bf16-appropriate tolerance.
    ubf, ldbf = run(x, cond, fused, block_batch=128, mxu_dtype=jnp.bfloat16)
    jax.block_until_ready((ubf, ldbf))
    assert jnp.allclose(ubf, u_ref, atol=0.25, rtol=0.05)
    assert jnp.allclose(ldbf, ld_ref, atol=0.25, rtol=0.05)

    # TODO(synk): mode='inverse' (sequential per-column Gauss-Seidel recurrence)
    # is inherently O(D)-sequential and data-dependent; best done as D wrapped
    # kernel calls rather than one Pallas kernel — not implemented here.
    print("KERNEL_OK")
</pallas_src>

<mosaic_0001>
module attributes {stable_mosaic.version = 11 : i64} {
  func.func @_made_split_fused_kernel(%arg0: i32, %arg1: memref<16x128xf32, #tpu.memory_space<vmem>>, %arg2: memref<64x16xf32, #tpu.memory_space<vmem>>, %arg3: memref<64x1xf32, #tpu.memory_space<vmem>>, %arg4: memref<64x64xf32, #tpu.memory_space<vmem>>, %arg5: memref<64x1xf32, #tpu.memory_space<vmem>>, %arg6: memref<16x64xf32, #tpu.memory_space<vmem>>, %arg7: memref<16x1xf32, #tpu.memory_space<vmem>>, %arg8: memref<8x128xf32, #tpu.memory_space<vmem>>, %arg9: memref<1x128xf32, #tpu.memory_space<vmem>>) attributes {dimension_semantics = [#tpu.dimension_semantics<parallel>], iteration_bounds = array<i64: 2>, scalar_prefetch = 0 : i64, scratch_operands = 0 : i64, tpu.core_type = #tpu.core_type<tc>, window_params = [{transform_indices = @transform_0, window_bounds = array<i64: 16, 128>}, {pipeline_mode = #tpu.pipeline_mode<synchronous>, transform_indices = @transform_1, window_bounds = array<i64: 64, 16>}, {pipeline_mode = #tpu.pipeline_mode<synchronous>, transform_indices = @transform_2, window_bounds = array<i64: 64, 1>}, {pipeline_mode = #tpu.pipeline_mode<synchronous>, transform_indices = @transform_3, window_bounds = array<i64: 64, 64>}, {pipeline_mode = #tpu.pipeline_mode<synchronous>, transform_indices = @transform_4, window_bounds = array<i64: 64, 1>}, {pipeline_mode = #tpu.pipeline_mode<synchronous>, transform_indices = @transform_5, window_bounds = array<i64: 16, 64>}, {pipeline_mode = #tpu.pipeline_mode<synchronous>, transform_indices = @transform_6, window_bounds = array<i64: 16, 1>}, {transform_indices = @transform_7, window_bounds = array<i64: 8, 128>}, {transform_indices = @transform_8, window_bounds = array<i64: 1, 128>}]} {
    %c0 = arith.constant 0 : index
    %c0_0 = arith.constant 0 : index
    %0 = vector.load %arg1[%c0, %c0_0] : memref<16x128xf32, #tpu.memory_space<vmem>>, vector<16x128xf32>
    %1 = tpu.iota {dimensions = array<i32: 0>} : vector<64x1xi32>
    %c32_i32 = arith.constant 32 : i32
    %2 = vector.broadcast %c32_i32 : i32 to vector<64x1xi32>
    %3 = arith.cmpi slt, %1, %2 : vector<64x1xi32>
    %c0_1 = arith.constant 0 : index
    %c0_2 = arith.constant 0 : index
    %4 = vector.load %arg2[%c0_1, %c0_2] : memref<64x16xf32, #tpu.memory_space<vmem>>, vector<64x16xf32>
    %cst = arith.constant dense<0.000000e+00> : vector<64x128xf32>
    %5 = tpu.matmul %4, %0, %cst {dimension_numbers = #tpu.dot_dimension_numbers<[1], [0], [0], [1], [0, 0, 1, 1], [], []>} : vector<64x16xf32>, vector<16x128xf32>, vector<64x128xf32> -> vector<64x128xf32>
    %c0_3 = arith.constant 0 : index
    %c0_4 = arith.constant 0 : index
    %6 = vector.load %arg3[%c0_3, %c0_4] : memref<64x1xf32, #tpu.memory_space<vmem>>, vector<64x1xf32>
    %7 = vector.broadcast %6 : vector<64x1xf32> to vector<64x128xf32>
    %8 = arith.addf %5, %7 : vector<64x128xf32>
    %9 = math.tanh %8 : vector<64x128xf32>
    %cst_5 = arith.constant 0.000000e+00 : f32
    %10 = vector.broadcast %cst_5 : f32 to vector<64x128xf32>
    %11 = arith.maximumf %8, %10 : vector<64x128xf32>
    %12 = vector.shape_cast %3 : vector<64x1xi1> to vector<64x1xi1>
    %13 = vector.broadcast %12 : vector<64x1xi1> to vector<64x128xi1>
    %14 = arith.select %13, %9, %11 : vector<64x128xi1>, vector<64x128xf32>
    %c0_6 = arith.constant 0 : index
    %c0_7 = arith.constant 0 : index
    %15 = vector.load %arg4[%c0_6, %c0_7] : memref<64x64xf32, #tpu.memory_space<vmem>>, vector<64x64xf32>
    %cst_8 = arith.constant dense<0.000000e+00> : vector<64x128xf32>
    %16 = tpu.matmul %15, %14, %cst_8 {dimension_numbers = #tpu.dot_dimension_numbers<[1], [0], [0], [1], [0, 0, 1, 1], [], []>} : vector<64x64xf32>, vector<64x128xf32>, vector<64x128xf32> -> vector<64x128xf32>
    %c0_9 = arith.constant 0 : index
    %c0_10 = arith.constant 0 : index
    %17 = vector.load %arg5[%c0_9, %c0_10] : memref<64x1xf32, #tpu.memory_space<vmem>>, vector<64x1xf32>
    %18 = vector.broadcast %17 : vector<64x1xf32> to vector<64x128xf32>
    %19 = arith.addf %16, %18 : vector<64x128xf32>
    %20 = math.tanh %19 : vector<64x128xf32>
    %cst_11 = arith.constant 0.000000e+00 : f32
    %21 = vector.broadcast %cst_11 : f32 to vector<64x128xf32>
    %22 = arith.maximumf %19, %21 : vector<64x128xf32>
    %23 = vector.shape_cast %3 : vector<64x1xi1> to vector<64x1xi1>
    %24 = vector.broadcast %23 : vector<64x1xi1> to vector<64x128xi1>
    %25 = arith.select %24, %20, %22 : vector<64x128xi1>, vector<64x128xf32>
    %c0_12 = arith.constant 0 : index
    %c0_13 = arith.constant 0 : index
    %26 = vector.load %arg6[%c0_12, %c0_13] : memref<16x64xf32, #tpu.memory_space<vmem>>, vector<16x64xf32>
    %cst_14 = arith.constant dense<0.000000e+00> : vector<16x128xf32>
    %27 = tpu.matmul %26, %25, %cst_14 {dimension_numbers = #tpu.dot_dimension_numbers<[1], [0], [0], [1], [0, 0, 1, 1], [], []>} : vector<16x64xf32>, vector<64x128xf32>, vector<16x128xf32> -> vector<16x128xf32>
    %c0_15 = arith.constant 0 : index
    %c0_16 = arith.constant 0 : index
    %28 = vector.load %arg7[%c0_15, %c0_16] : memref<16x1xf32, #tpu.memory_space<vmem>>, vector<16x1xf32>
    %29 = vector.broadcast %28 : vector<16x1xf32> to vector<16x128xf32>
    %30 = arith.addf %27, %29 : vector<16x128xf32>
    %31 = vector.extract_strided_slice %0 {offsets = [0, 0], sizes = [8, 128], strides = [1, 1]} : vector<16x128xf32> to vector<8x128xf32>
    %32 = vector.extract_strided_slice %30 {offsets = [0, 0], sizes = [8, 128], strides = [1, 1]} : vector<16x128xf32> to vector<8x128xf32>
    %33 = vector.extract_strided_slice %30 {offsets = [8, 0], sizes = [8, 128], strides = [1, 1]} : vector<16x128xf32> to vector<8x128xf32>
    %34 = arith.subf %31, %32 : vector<8x128xf32>
    %cst_17 = arith.constant 0.000000e+00 : f32
    %35 = vector.broadcast %cst_17 : f32 to vector<8x128xf32>
    %36 = arith.subf %35, %33 : vector<8x128xf32>
    %37 = math.exp %36 : vector<8x128xf32>
    %38 = arith.mulf %34, %37 : vector<8x128xf32>
    %c0_18 = arith.constant 0 : index
    %c0_19 = arith.constant 0 : index
    %39 = vector.load %arg8[%c0_18, %c0_19] : memref<8x128xf32, #tpu.memory_space<vmem>>, vector<8x128xf32>
    tpu.vector_store %arg8[%c0_18, %c0_19], %38 {strides = array<i32>} : memref<8x128xf32, #tpu.memory_space<vmem>>, vector<8x128xf32>,
    %cst_20 = arith.constant dense<0.000000e+00> : vector<128xf32>
    %40 = vector.multi_reduction <add>, %33, %cst_20 [0] : vector<8x128xf32> to vector<128xf32>
    %41 = vector.shape_cast %40 : vector<128xf32> to vector<1x128xf32>
    %cst_21 = arith.constant 0.000000e+00 : f32
    %42 = vector.broadcast %cst_21 : f32 to vector<1x128xf32>
    %43 = arith.subf %42, %41 : vector<1x128xf32>
    %c0_22 = arith.constant 0 : index
    %c0_23 = arith.constant 0 : index
    %44 = vector.load %arg9[%c0_22, %c0_23] : memref<1x128xf32, #tpu.memory_space<vmem>>, vector<1x128xf32>
    tpu.vector_store %arg9[%c0_22, %c0_23], %43 {strides = array<i32>} : memref<1x128xf32, #tpu.memory_space<vmem>>, vector<1x128xf32>,
    return
  }
  func.func @transform_0(%arg0: i32) -> (i32, i32) {
    %c0_i32 = arith.constant 0 : i32
    %c0_i32_0 = arith.constant 0 : i32
    return %c0_i32, %arg0 : i32, i32
  }
  func.func @transform_1(%arg0: i32) -> (i32, i32) {
    %c0_i32 = arith.constant 0 : i32
    %c0_i32_0 = arith.constant 0 : i32
    %c0_i32_1 = arith.constant 0 : i32
    return %c0_i32, %c0_i32_0 : i32, i32
  }
  func.func @transform_2(%arg0: i32) -> (i32, i32) {
    %c0_i32 = arith.constant 0 : i32
    %c0_i32_0 = arith.constant 0 : i32
    %c0_i32_1 = arith.constant 0 : i32
    return %c0_i32, %c0_i32_0 : i32, i32
  }
  func.func @transform_3(%arg0: i32) -> (i32, i32) {
    %c0_i32 = arith.constant 0 : i32
    %c0_i32_0 = arith.constant 0 : i32
    %c0_i32_1 = arith.constant 0 : i32
    return %c0_i32, %c0_i32_0 : i32, i32
  }
  func.func @transform_4(%arg0: i32) -> (i32, i32) {
    %c0_i32 = arith.constant 0 : i32
    %c0_i32_0 = arith.constant 0 : i32
    %c0_i32_1 = arith.constant 0 : i32
    return %c0_i32, %c0_i32_0 : i32, i32
  }
  func.func @transform_5(%arg0: i32) -> (i32, i32) {
    %c0_i32 = arith.constant 0 : i32
    %c0_i32_0 = arith.constant 0 : i32
    %c0_i32_1 = arith.constant 0 : i32
    return %c0_i32, %c0_i32_0 : i32, i32
  }
  func.func @transform_6(%arg0: i32) -> (i32, i32) {
    %c0_i32 = arith.constant 0 : i32
    %c0_i32_0 = arith.constant 0 : i32
    %c0_i32_1 = arith.constant 0 : i32
    return %c0_i32, %c0_i32_0 : i32, i32
  }
  func.func @transform_7(%arg0: i32) -> (i32, i32) {
    %c0_i32 = arith.constant 0 : i32
    %c0_i32_0 = arith.constant 0 : i32
    return %c0_i32, %arg0 : i32, i32
  }
  func.func @transform_8(%arg0: i32) -> (i32, i32) {
    %c0_i32 = arith.constant 0 : i32
    %c0_i32_0 = arith.constant 0 : i32
    return %c0_i32, %arg0 : i32, i32
  }
}

</mosaic_0001>

<bundles_post_ra>
// kernel: made_split_direct.1
= control target key start
LH: loop header
LB: loop body
LE: loop exit
PB: predicated region body
PF: predicated region fallthrough
CT: control target
= control target key end

     0   :  { %s1690_s0 = inlined_call_operand.vmem [shape: f32[16,256], index: 0, kind: input, shape index: {}]   ;;  %s1691_s1 = inlined_call_operand.vmem [shape: f32[64,16], index: 1, kind: input, shape index: {}]   ;;  %s1692_s2 = inlined_call_operand.vmem [shape: f32[64,1], index: 2, kind: input, shape index: {}]   ;;  %s1693_s3 = inlined_call_operand.vmem [shape: f32[64,64], index: 3, kind: input, shape index: {}]   ;;  %s1694_s4 = inlined_call_operand.vmem [shape: f32[64,1], index: 4, kind: input, shape index: {}]   ;;  %s1695_s5 = inlined_call_operand.vmem [shape: f32[16,64], index: 5, kind: input, shape index: {}]   ;;  %s1696_s6 = inlined_call_operand.vmem [shape: f32[16,1], index: 6, kind: input, shape index: {}]   ;;  %s1697_s7 = inlined_call_operand.hbm [shape: f32[8,256], index: 7, kind: output, shape index: {0}]   ;;  %s1698_s8 = inlined_call_operand.hbm [shape: f32[1,256], index: 8, kind: output, shape index: {1}]  }
   0x1   :  { %1699 = sst [smem:[#allocation9_spill]] %s1690_s0 }
   0x2   :  { %14 = vsyncpa [#allocation4], 0 }
   0x3   :  { %16 = vsyncpa [#allocation4 + $0x1], 0 }
   0x4   :  { %17 = vsyncpa [#allocation6], 0 }
   0x5   :  { %19 = vsyncpa [#allocation6 + $0x1], 0  ;;  %s1415_s27 = smov 0   ;;  %s1417_s28 = smov 0  }
   0x6   :  { %s1419_s29 = smov 0   ;;  %s1421_s30 = smov 0  }
   0x7 LB: > { %s1436_s9 = sadd.s32 4294967295, %s1365_s30   ;;  %s1040_s10 = sadd.s32 4294967294, %s1365_s30   ;;  %s1365_s30 = sphi %s1421_s30, %s1706_s30   ;;  %s1361_s29 = sphi %s1419_s29, %s1705_s29   ;;  %s1357_s28 = sphi %s1417_s28, %s1704_s28   ;;  %s1353_s27 = sphi %s1415_s27, %s1703_s27  }
   0x8   : > { %s1440_s11 = sadd.s32 1, %s1365_s30   ;;  %s32_s12 = sadd.s32 1, %s1361_s29 }
   0x9   : > { %s29_s13 = ssub.s32 %s1365_s30, %s1440_s11  ;;  %p39_p0 = scmp.ne.s32.totalorder %s1361_s29, %s1357_s28 }
   0xa   : > { %p30_p1 = scmp.eq.s32.totalorder %s29_s13, 0  ;;  %p40_p2 = scmp.eq.s32.totalorder %s1365_s30, 0 }
   0xb   : > { %p195_p3 = scmp.eq.s32.totalorder %s1436_s9, 1  ;;  %p200_p4 = scmp.ne.s32.totalorder %s1357_s28, %s1353_s27 }
   0xc   : > { %s1452_s14 = scalar_select %p30_p1, %s1361_s29, %s32_s12  }
   0xd   : > { %p41_p5 = por %p40_p2, %p39_p0  ;;  %p1454_p6 = por %p195_p3, %p39_p0 }
   0xe   : > { %p201_p7 = scmp.eq.s32.totalorder %s1040_s10, 1  ;;  %p1042_p9 = scmp.ge.s32.totalorder %s1365_s30, 2 }
  0x10   : > { %p1458_p8 = por %p201_p7, %p200_p4  ;;  %261 = sbr.rel (%p1042_p9) target bundleno = 34 (0x22), region = 40 }
  0x17   : > { %264 = sbr.rel (!%p41_p5) target bundleno = 34 (0x22), region = 44  ;;  %s266_s17 = sand.u32 (%p41_p5), 1, %s1361_s29  }
  0x18   : > { %s1044_s18 = sshll.u32 (%p41_p5), %s1365_s30, 3  ;;  %s1043_s19 = sshll.u32 (%p41_p5), %s266_s17, 4 }
  0x19   : > { %s1702_s0 = sld [smem:[#allocation9_spill]] (%p41_p5)  ;;  %s268_s23 = scalar_lea.vmem (%p41_p5), [#allocation2], %s1043_s19 }
  0x1f   : > { %s270_s22 = scalar_lea.vmem %s1702_s0, %s1044_s18 }
  0x20   : > { %v300_v0 = vld [vmem:[%s270_s22] sm:$0xff]  ;;  %v302_v1 = vld [vmem:[%s270_s22 + $0x10] sm:$0xff] }
  0x21   : > { %301 = vst [vmem:[%s268_s23] sm:$0xff] %v300_v0  ;;  %303 = vst [vmem:[%s268_s23 + $0x8] sm:$0xff] %v302_v1 }
  0x22 PF: > { %p1045_p10 = scmp.ge.s32.totalorder %s1365_s30, 1  ;;  %p308_p11 = scmp.lt.s32.totalorder %s1365_s30, 3 }
  0x24   : > { %p309_p12 = pnand %p1045_p10, %p308_p11 }
  0x25   : > { %s1473_s24 = sand.u32 (!%p309_p12), 1, %s1357_s28   ;;  %v371_v2 = vld [vmem:[%s1691_s1] sm:$0xff] (!%p309_p12)  ;;  %vm427_vm0 = vcmask (!%p309_p12), 130048   ;;  %v1367_v3 = vmov (!%p309_p12), 0   ;;  %v381_v7 = vld [vmem:[%s1692_s2 + $0x10] sm:$0xff] (!%p309_p12)  ;;  %v380_v9 = vld [vmem:[%s1692_s2 + $0x8] sm:$0xff] (!%p309_p12) }
  0x26   : > { %312 = sbr.rel (%p309_p12) target bundleno = 801 (0x321), region = 82  ;;  %s1046_s10 = sshll.u32 (!%p309_p12), %s1473_s24, 4  ;;  %1111 = vmatprep.mubr.msk.f32.mxu0 (!%p309_p12), %vm427_vm0, %v371_v2  ;;  %1251 = vset.pattern.permute.xlu0 (!%p309_p12), %v1367_v3  ;;  %v379_v4 = vld [vmem:[%s1692_s2] sm:$0xff] (!%p309_p12)  ;;  %v382_v10 = vld [vmem:[%s1692_s2 + $0x18] sm:$0xff] (!%p309_p12)  ;;  %v372_v11 = vld [vmem:[%s1691_s1 + $0x8] sm:$0xff] (!%p309_p12)  ;;  %vm653_vm1 = vcmask (!%p309_p12), 523264  }
  0x27   : > { %1252 = vset.pattern.permute.xlu1 (!%p309_p12), %v1367_v3  ;;  %s317_s17 = scalar_lea.vmem (!%p309_p12), [#allocation2], %s1046_s10  ;;  %389 = vperm.xlu0 (!%p309_p12), %1251, %v379_v4   ;;  %v373_v12 = vld [vmem:[%s1691_s1 + $0x10] sm:$0xff] (!%p309_p12)  ;;  %v383_v13 = vld [vmem:[%s1692_s2 + $0x20] sm:$0xff] (!%p309_p12)  ;;  %v384_v14 = vld [vmem:[%s1692_s2 + $0x28] sm:$0xff] (!%p309_p12)  ;;  %s1047_s10 = sshll.u32 (!%p309_p12), %s1473_s24, 3 }
  0x28   : > { %v1483_v5 = vld [vmem:[%s317_s17] sm:$0xff] (!%p309_p12)  ;;  %v353_v6 = vld [vmem:[%s317_s17 + $0x8] sm:$0xff] (!%p309_p12)  ;;  %399 = vperm.xlu1 (!%p309_p12), %1252, %v381_v7   ;;  %s1068_s12 = sshll.u32 (!%p309_p12), %s1436_s9, 4  ;;  %s351_s13 = scalar_lea.vmem (!%p309_p12), [#allocation5], %s1473_s24 }
  0x29   : > { %v1170_v8 = vpack.c.bf16 (!%p309_p12), %v353_v6, %v1483_v5  ;;  %v374_v15 = vld [vmem:[%s1691_s1 + $0x18] sm:$0xff] (!%p309_p12)  ;;  %v375_v16 = vld [vmem:[%s1691_s1 + $0x20] sm:$0xff] (!%p309_p12)  ;;  %v385_v17 = vld [vmem:[%s1692_s2 + $0x30] sm:$0xff] (!%p309_p12)  ;;  %s947_s17 = sshll.u32 (!%p309_p12), %s351_s13, 4  ;;  %s1067_s18 = sshll.u32 (!%p309_p12), %s1436_s9, 7  ;;  %s1617_s17 = int_to_ptr.vmem [resolvable:$true] %s947_s17 }
  0x2a   : > { %v386_v18 = vld [vmem:[%s1692_s2 + $0x38] sm:$0xff] (!%p309_p12)  ;;  %v376_v19 = vld [vmem:[%s1691_s1 + $0x28] sm:$0xff] (!%p309_p12)  ;;  %v377_v20 = vld [vmem:[%s1691_s1 + $0x30] sm:$0xff] (!%p309_p12)  ;;  %s1609_s19 = scalar_lea.vmem (!%p309_p12), [#allocation3], %s1047_s10  ;;  %s1615_s23 = scalar_lea.hbm (!%p309_p12), %s1698_s8, %s1068_s12 }
  0x2b   : > { %1171 = vmatprep.subr.bf16.mxu0 (!%p309_p12), %v1170_v8  ;;  %394 = vperm.xlu0 (!%p309_p12), %1251, %v380_v9   ;;  %v605_v21 = vld [vmem:[%s1694_s4] sm:$0xff] (!%p309_p12)  ;;  %v606_v22 = vld [vmem:[%s1694_s4 + $0x8] sm:$0xff] (!%p309_p12)  ;;  %v378_v23 = vld [vmem:[%s1691_s1 + $0x38] sm:$0xff] (!%p309_p12)  ;;  %s934_s20 = sshll.u32 (!%p309_p12), %s1609_s19, 4  ;;  %s1623_s26 = scalar_lea.hbm (!%p309_p12), %s1697_s7, %s1067_s18  ;;  %s1625_s20 = int_to_ptr.vmem [resolvable:$true] %s934_s20 }
  0x2c   : > { %1173 = vmatpush3.bf16.msra.mxu0 (!%p309_p12), %v1170_v8  ;;  %404 = vperm.xlu1 (!%p309_p12), %1252, %v382_v10   ;;  %v607_v24 = vld [vmem:[%s1694_s4 + $0x10] sm:$0xff] (!%p309_p12)  ;;  %v608_v25 = vld [vmem:[%s1694_s4 + $0x18] sm:$0xff] (!%p309_p12)  ;;  %v609_v26 = vld [vmem:[%s1694_s4 + $0x20] sm:$0xff] (!%p309_p12)  ;;  %s922_s10 = scalar_lea.sflag (!%p309_p12), [#allocation6], %s1473_s24  ;;  %s1271_s12 = scalar_lea.vmem (!%p309_p12), %s1617_s17, 16 }
  0x2d   : > { %v610_v27 = vld [vmem:[%s1694_s4 + $0x28] sm:$0xff]  ;;  %v611_v28 = vld [vmem:[%s1694_s4 + $0x30] sm:$0xff]  ;;  %v612_v29 = vld [vmem:[%s1694_s4 + $0x38] sm:$0xff]  ;;  %p1272_p13 = scmp.ne.s32.totalorder %s1617_s17, %s1271_s12  ;;  %s1368_s21 = smov [#allocation5]  }
  0x2e   : > { %v810_v30 = vld [vmem:[%s1696_s6 + $0x8] sm:$0xff]  ;;  %v809_v31 = vld [vmem:[%s1696_s6] sm:$0xff]  ;;  %v599_v7 = vld [vmem:[%s1693_s3 + $0x10] sm:$0xff]  ;;  %s1275_s22 = sshll.u32 %s1368_s21, 4  ;;  %s1276_s22 = int_to_ptr.vmem [resolvable:$false] %s1275_s22 }
  0x2f   : > { %1112 = vmatmul.mubr.msk.f32.vlgmr.msra.gmra.mrb[0].mxu0 %vm427_vm0, %v372_v11  ;;  %409 = vperm.xlu0 %1251, %v383_v13   ;;  %v597_v32 = vld [vmem:[%s1693_s3] sm:$0xff]  ;;  %v598_v6 = vld [vmem:[%s1693_s3 + $0x8] sm:$0xff]  ;;  %v600_v8 = vld [vmem:[%s1693_s3 + $0x18] sm:$0xff]  ;;  %p1273_p0 = pnand %p1272_p13, %p1454_p6  ;;  %s1277_s0 = scalar_lea.vmem %s1276_s22, 32 }
  0x30   : > { %1114 = vmatprep.mubr.msk.f32.mxu0 %vm427_vm0, %v373_v12  ;;  %414 = vperm.xlu1 %1252, %v384_v14   ;;  %v601_v9 = vld [vmem:[%s1693_s3 + $0x20] sm:$0xff]  ;;  %v602_v10 = vld [vmem:[%s1693_s3 + $0x28] sm:$0xff]  ;;  %v603_v11 = vld [vmem:[%s1693_s3 + $0x30] sm:$0xff]  ;;  %p1278_p2 = scmp.lt.s32.totalorder %s1617_s17, %s1276_s22  ;;  %p1279_p3 = scmp.lt.s32.totalorder %s1277_s0, %s1271_s12 }
  0x31   : > { %1139 = vmatprep.mubr.msk.f32.mxu1 %vm653_vm1, %v597_v32  ;;  %v604_v12 = vld [vmem:[%s1693_s3 + $0x38] sm:$0xff]  ;;  %v807_v13 = vld [vmem:[%s1695_s5] sm:$0xff]  ;;  %p1274_p1 = pneg %p1273_p0 }
  0x32   : > { %p1280_p4 = por %p1279_p3, %p1278_p2 }
  0x33   : > { %1115 = vmatmul.mubr.msk.f32.gmra.mrb[2].mxu0 %vm427_vm0, %v374_v15  ;;  %419 = vperm.xlu0 %1251, %v385_v17  }
  0x34   : > { %1117 = vmatprep.mubr.msk.f32.mxu0 %vm427_vm0, %v375_v16  ;;  %424 = vperm.xlu1 %1252, %v386_v18   ;;  %p1281_p5 = pnand %p1280_p4, %p1274_p1 }
  0x37   : > { %1118 = vmatmul.mubr.msk.f32.gmra.mrb[4].mxu0 %vm427_vm0, %v376_v19  ;;  %615 = vperm.xlu0 %1251, %v605_v21  }
  0x38   : > { %1120 = vmatprep.mubr.msk.f32.mxu0 %vm427_vm0, %v377_v20  ;;  %620 = vperm.xlu1 %1252, %v606_v22  }
  0x3b   : > { %1121 = vmatmul.mubr.msk.f32.gmra.mrb[6].mxu0 %vm427_vm0, %v378_v23  ;;  %625 = vperm.xlu0 %1251, %v607_v24  }
  0x3c   : > { %630 = vperm.xlu1 %1252, %v608_v25   ;;  %1167 = vmatprep.mubr.msk.f32.mxu0 %vm653_vm1, %v807_v13 }
  0x3f   : > { %635 = vperm.xlu0 %1251, %v609_v26  }
  0x40   : > { %640 = vperm.xlu1 %1252, %v610_v27  }
  0x43   : > { %645 = vperm.xlu0 %1251, %v611_v28  }
  0x44   : > { %650 = vperm.xlu1 %1252, %v612_v29  }
  0x47   : > { %818 = vperm.xlu0 %1251, %v810_v30  }
  0x48   : > { %813 = vperm.xlu1 %1252, %v809_v31  }
  0xa6   : > { %v390_v33 = vpop.permute.xlu0 %389 }
  0xa7   : > { %v400_v34 = vpop.permute.xlu1 %399 }
  0xaa   : > { %v395_v35 = vpop.permute.xlu0 %394 }
  0xab   : > { %v405_v36 = vpop.permute.xlu1 %404 }
  0xae   : > { %v410_v46 = vpop.permute.xlu0 %409 }
  0xaf   : > { %v415_v44 = vpop.permute.xlu1 %414 }
  0xb2   : > { %v420_v56 = vpop.permute.xlu0 %419 }
  0xb3   : > { %v425_v52 = vpop.permute.xlu1 %424 }
  0xb6   : > { %v616_v15 = vpop.permute.xlu0 %615 }
  0xb7   : > { %v621_v14 = vpop.permute.xlu1 %620 }
  0xba   : > { %v626_v18 = vpop.permute.xlu0 %625 }
  0xbb   : > { %v631_v16 = vpop.permute.xlu1 %630 }
  0xbe   : > { %v636_v27 = vpop.permute.xlu0 %635 }
  0xbf   : > { %v641_v25 = vpop.permute.xlu1 %640 }
 0x102   : > { %v1113_v37 = vpop.f32.mrb[0].mxu0 }
 0x103   : > { %v524_v38 = vadd.f32 %v1113_v37, %v395_v35  ;;  %v518_v39 = vpop.f32.mrb[1].mxu0  ;;  %v646_v37 = vpop.permute.xlu0 %645 }
 0x104   : > { %v519_v40 = vadd.f32 %v518_v39, %v390_v33  ;;  %v651_v33 = vpop.permute.xlu1 %650 }
 0x105   : > { %1253 = vtanh.f32 %v524_v38 }
 0x106   : > { %1255 = vtanh.f32 %v519_v40  ;;  %v1116_v41 = vpop.f32.mrb[2].mxu0 }
 0x107   : > { %v534_v42 = vadd.f32 %v1116_v41, %v405_v36  ;;  %v528_v43 = vpop.f32.mrb[3].mxu0 }
 0x108   : > { %v529_v45 = vadd.f32 %v528_v43, %v400_v34 }
 0x109   : > { %1257 = vtanh.f32 %v534_v42 }
 0x10a   : > { %1259 = vtanh.f32 %v529_v45  ;;  %v1119_v47 = vpop.f32.mrb[4].mxu0 }
 0x10b   : > { %v544_v48 = vadd.f32 %v1119_v47, %v415_v44  ;;  %v538_v49 = vpop.f32.mrb[5].mxu0 }
 0x10c   : > { %v539_v50 = vadd.f32 %v538_v49, %v410_v46 }
 0x10d   : > { %v570_v51 = vmax.f32 %v544_v48, 0.0 }
 0x10e   : > { %v569_v53 = vmax.f32 %v539_v50, 0.0  ;;  %v1122_v54 = vpop.f32.mrb[6].mxu0  ;;  %v808_v50 = vld [vmem:[%s1695_s5 + $0x8] sm:$0xff] }
 0x10f   : > { %v1254_v55 = vpop.eup %1253  ;;  %v554_v57 = vadd.f32 %v1122_v54, %v425_v52  ;;  %v548_v58 = vpop.f32.mrb[7].mxu0 }
 0x110   : > { %v1256_v59 = vpop.eup %1255  ;;  %v1182_v60 = vpack.c.bf16 %v570_v51, %v569_v53  ;;  %v549_v61 = vadd.f32 %v548_v58, %v420_v56  ;;  %v819_v51 = vpop.permute.xlu0 %818 }
 0x111   : > { %v572_v62 = vmax.f32 %v554_v57, 0.0  ;;  %v1174_v63 = vpack.c.bf16 %v1254_v55, %v1256_v59 }
 0x112   : > { %v571_v0 = vmax.f32 %v549_v61, 0.0  ;;  %v814_v61 = vpop.permute.xlu1 %813 }
 0x113   : > { %v1258_v1 = vpop.eup %1257  ;;  %1175 = vmatprep.subr.bf16.mxu1 %v1174_v63 }
 0x114   : > { %v1260_v2 = vpop.eup %1259  ;;  %v1186_v3 = vpack.c.bf16 %v572_v62, %v571_v0  ;;  %1177 = vmatpush3.bf16.msra.mxu1 %v1174_v63 }
 0x115   : > { %v1178_v4 = vpack.c.bf16 %v1258_v1, %v1260_v2 }
 0x117   : > { %1179 = vmatprep.subr.bf16.mxu1 %v1178_v4 }
 0x118   : > { %1181 = vmatpush3.bf16.msra.mxu1 %v1178_v4 }
 0x119   : > { %1183 = vmatprep.subr.bf16.mxu1 %v1182_v60 }
 0x11c   : > { %1185 = vmatpush3.bf16.msra.mxu1 %v1182_v60 }
 0x11d   : > { %1187 = vmatprep.subr.bf16.mxu1 %v1186_v3 }
 0x120   : > { %1189 = vmatpush3.bf16.msra.mxu1 %v1186_v3 }
 0x123   : > { %1140 = vmatmul.mubr.msk.f32.vlgmr.msra.gmra.mrb[0].mxu1 %vm653_vm1, %v598_v6 }
 0x124   : > { %1142 = vmatprep.mubr.msk.f32.mxu1 %vm653_vm1, %v599_v7 }
 0x127   : > { %1143 = vmatmul.mubr.msk.f32.gmra.mrb[2].mxu1 %vm653_vm1, %v600_v8 }
 0x128   : > { %1145 = vmatprep.mubr.msk.f32.mxu1 %vm653_vm1, %v601_v9 }
 0x12b   : > { %1146 = vmatmul.mubr.msk.f32.gmra.mrb[4].mxu1 %vm653_vm1, %v602_v10 }
 0x12c   : > { %1148 = vmatprep.mubr.msk.f32.mxu1 %vm653_vm1, %v603_v11 }
 0x12f   : > { %1149 = vmatmul.mubr.msk.f32.gmra.mrb[6].mxu1 %vm653_vm1, %v604_v12 }
 0x1f6   : > { %v1141_v17 = vpop.f32.mrb[0].mxu1 }
 0x1f7   : > { %v750_v19 = vadd.f32 %v1141_v17, %v621_v14  ;;  %v744_v20 = vpop.f32.mrb[1].mxu1 }
 0x1f8   : > { %v745_v21 = vadd.f32 %v744_v20, %v616_v15 }
 0x1f9   : > { %1261 = vtanh.f32 %v750_v19 }
 0x1fa   : > { %1263 = vtanh.f32 %v745_v21  ;;  %v1144_v22 = vpop.f32.mrb[2].mxu1 }
 0x1fb   : > { %v760_v23 = vadd.f32 %v1144_v22, %v631_v16  ;;  %v754_v24 = vpop.f32.mrb[3].mxu1 }
 0x1fc   : > { %v755_v26 = vadd.f32 %v754_v24, %v626_v18 }
 0x1fd   : > { %1265 = vtanh.f32 %v760_v23 }
 0x1fe   : > { %1267 = vtanh.f32 %v755_v26  ;;  %v1147_v28 = vpop.f32.mrb[4].mxu1 }
 0x1ff   : > { %v770_v29 = vadd.f32 %v1147_v28, %v641_v25  ;;  %v764_v30 = vpop.f32.mrb[5].mxu1 }
 0x200   : > { %v765_v31 = vadd.f32 %v764_v30, %v636_v27 }
 0x201   : > { %v796_v32 = vmax.f32 %v770_v29, 0.0 }
 0x202   : > { %v795_v34 = vmax.f32 %v765_v31, 0.0  ;;  %v1150_v35 = vpop.f32.mrb[6].mxu1 }
 0x203   : > { %v1262_v36 = vpop.eup %1261  ;;  %v780_v38 = vadd.f32 %v1150_v35, %v651_v33  ;;  %v774_v39 = vpop.f32.mrb[7].mxu1 }
 0x204   : > { %v1264_v40 = vpop.eup %1263  ;;  %v1198_v41 = vpack.c.bf16 %v796_v32, %v795_v34  ;;  %v775_v42 = vadd.f32 %v774_v39, %v646_v37 }
 0x205   : > { %v798_v43 = vmax.f32 %v780_v38, 0.0  ;;  %v1190_v44 = vpack.c.bf16 %v1262_v36, %v1264_v40 }
 0x206   : > { %v797_v45 = vmax.f32 %v775_v42, 0.0 }
 0x207   : > { %v1266_v46 = vpop.eup %1265  ;;  %1191 = vmatprep.subr.bf16.mxu0 %v1190_v44 }
 0x208   : > { %v1268_v47 = vpop.eup %1267  ;;  %v1202_v48 = vpack.c.bf16 %v798_v43, %v797_v45  ;;  %1193 = vmatpush3.bf16.msra.mxu0 %v1190_v44 }
 0x209   : > { %v1194_v49 = vpack.c.bf16 %v1266_v46, %v1268_v47 }
 0x20b   : > { %1195 = vmatprep.subr.bf16.mxu0 %v1194_v49 }
 0x20c   : > { %1197 = vmatpush3.bf16.msra.mxu0 %v1194_v49 }
 0x20d   : > { %1199 = vmatprep.subr.bf16.mxu0 %v1198_v41 }
 0x210   : > { %1201 = vmatpush3.bf16.msra.mxu0 %v1198_v41 }
 0x211   : > { %1203 = vmatprep.subr.bf16.mxu0 %v1202_v48 }
 0x214   : > { %1205 = vmatpush3.bf16.msra.mxu0 %v1202_v48 }
 0x217   : > { %1168 = vmatmul.mubr.msk.f32.vlgmr.msra.gmra.mrb[8].mxu0 %vm653_vm1, %v808_v50 }
 0x2ea   : > { %v1169_v52 = vpop.f32.mrb[8].mxu0 }
 0x2eb   : > { %v899_v53 = vadd.f32 %v1169_v52, %v819_v51  ;;  %v893_v54 = vpop.f32.mrb[9].mxu0 }
 0x2ec   : > { %v894_v63 = vadd.f32 %v893_v54, %v814_v61 }
 0x2ed   : > { %v903_v55 = vsub.f32 0.0, %v899_v53  ;;  %v908_v56 = vrot.slane %v899_v53, 4 }
 0x2ee   : > { %v902_v2 = vsub.f32 %v1483_v5, %v894_v63 }
 0x2ef   : > { %v904_v57 = vmul.f32 1.442695, %v903_v55  ;;  %v909_v58 = vadd.f32 %v908_v56, %v899_v53 }
 0x2f1   : > { %1269 = vpow2.f32 %v904_v57  ;;  %v910_v59 = vrot.slane %v909_v58, 2 }
 0x2f3   : > { %v911_v60 = vadd.f32 %v910_v59, %v909_v58 }
 0x2f5   : > { %v912_v62 = vrot.slane %v911_v60, 1 }
 0x2f7   : > { %v913_v0 = vadd.f32 %v912_v62, %v911_v60 }
 0x2f9   : > { %v914_v1 = vsub.f32 0.0, %v913_v0 }
 0x2fb   : > { %v1270_v3 = vpop.eup %1269  ;;  %915 = vst [vmem:[%s351_s13] sm:$0x1] %v914_v1 }
 0x2fc   : > { %v906_v4 = vmul.f32 %v1270_v3, %v902_v2 }
 0x2fd   : > { %1284 = shalt.err (!%p1281_p5)
}
 0x2fe   : > { %s1285_s13 = scalar_lea.hbm %s1615_s23, 16  ;;  %s1289_s25 = scalar_lea.hbm %s1698_s8, 32 }
 0x2ff   : > { %p1286_p7 = scmp.ne.s32.totalorder %s1615_s23, %s1285_s13  ;;  %p1290_p12 = scmp.lt.u32.totalorder %s1615_s23, %s1698_s8 }
 0x300   : > { %p1291_p13 = scmp.lt.u32.totalorder %s1289_s25, %s1285_s13  ;;  %p1293_p1 = scmp.lt.u32.totalorder %s1285_s13, %s1615_s23 }
 0x301   : > { %p1287_p10 = pnand %p1286_p7, %p1454_p6 }
 0x302   : > { %p1292_p0 = por %p1291_p13, %p1290_p12 }
 0x303   : > { %p1288_p11 = pneg %p1287_p10 }
 0x304   : > { %p1294_p2 = por %p1293_p1, %p1292_p0 }
 0x306   : > { %p1295_p3 = pnand %p1294_p2, %p1288_p11 }
 0x308   : > { %1298 = shalt.err (!%p1295_p3)
}
 0x309   : > { %1207 = dma.vmem_to_hbm [thread:$0]  (%p1454_p6), %s1617_s17, 16, %s1615_s23, %s922_s10   ;;  %907 = vst [vmem:[%s1609_s19] sm:$0xff] %v906_v4 }
 0x30a   : > { %s917_s0 = scalar_lea.sflag [#allocation4], %s1473_s24  ;;  %s1299_s12 = scalar_lea.vmem %s1625_s20, 128 }
 0x30b   : > { %p1300_p4 = scmp.ne.s32.totalorder %s1625_s20, %s1299_s12  ;;  %s1369_s13 = smov [#allocation3]  }
 0x30c   : > { %s1303_s18 = sshll.u32 %s1369_s13, 4  ;;  %s1304_s18 = int_to_ptr.vmem [resolvable:$false] %s1303_s18 }
 0x30d   : > { %p1301_p5 = pnand %p1300_p4, %p1454_p6  ;;  %s1305_s9 = scalar_lea.vmem %s1304_s18, 256 }
 0x30e   : > { %p1306_p10 = scmp.lt.s32.totalorder %s1625_s20, %s1304_s18  ;;  %p1307_p11 = scmp.lt.s32.totalorder %s1305_s9, %s1299_s12 }
 0x30f   : > { %p1302_p7 = pneg %p1301_p5 }
 0x310   : > { %p1308_p12 = por %p1307_p11, %p1306_p10 }
 0x312   : > { %p1309_p13 = pnand %p1308_p12, %p1302_p7 }
 0x314   : > { %1312 = shalt.err (!%p1309_p13)
}
 0x315   : > { %s1313_s24 = scalar_lea.hbm %s1623_s26, 128  ;;  %s1317_s23 = scalar_lea.hbm %s1697_s7, 256 }
 0x316   : > { %p1314_p0 = scmp.ne.s32.totalorder %s1623_s26, %s1313_s24  ;;  %p1318_p3 = scmp.lt.u32.totalorder %s1623_s26, %s1697_s7 }
 0x317   : > { %p1319_p4 = scmp.lt.u32.totalorder %s1317_s23, %s1313_s24  ;;  %p1321_p7 = scmp.lt.u32.totalorder %s1313_s24, %s1623_s26 }
 0x318   : > { %p1315_p1 = pnand %p1314_p0, %p1454_p6 }
 0x319   : > { %p1320_p5 = por %p1319_p4, %p1318_p3 }
 0x31a   : > { %p1316_p2 = pneg %p1315_p1 }
 0x31b   : > { %p1322_p10 = por %p1321_p7, %p1320_p5 }
 0x31d   : > { %p1323_p11 = pnand %p1322_p10, %p1316_p2 }
 0x31f   : > { %1326 = shalt.err (!%p1323_p11)
}
 0x320   : > { %1206 = dma.vmem_to_hbm [thread:$0]  (%p1454_p6), %s1625_s20, 128, %s1623_s26, %s917_s0  }
 0x321 PF: > { %s959_s21 = sand.u32 1, %s1353_s27   ;;  %p1211_p12 = pnand %p1042_p9, %p1458_p8 }
 0x322   : > { %s960_s22 = scalar_lea.sflag [#allocation4], %s959_s21 }
 0x323   : > { %1344 = dma.done.wait (!%p1211_p12), %s960_s22, 128  }
 0x324   : > { %1346 = vsyncadd (!%p1211_p12), %s960_s22, 4294967168  ;;  %s969_s12 = scalar_lea.sflag [#allocation6], %s959_s21 }
 0x325   : > { %1348 = dma.done.wait (!%p1211_p12), %s969_s12, 16  }
 0x326   : > { %1350 = vsyncadd (!%p1211_p12), %s969_s12, 4294967280  ;;  %p22_p6 = scmp.ge.s32.totalorder %s1440_s11, 4   ;;  %s1703_s27 = smov %s1357_s28 }
 0x327   : > { %s1704_s28 = smov %s1361_s29  ;;  %s1705_s29 = smov %s1452_s14 }
 0x328   : > { %s1706_s30 = smov %s1440_s11  ;;  %24 = sbr.rel (!%p22_p6) target bundleno = 7 (0x7), region = 143 }
 0x32f   :  { %973 = vsyncpa [#allocation4], 1 }
 0x330   :  { %975 = vsyncpa [#allocation4 + $0x1], 1 }
 0x331   :  { %976 = vsyncpa [#allocation6], 1 }
 0x332   :  { %978 = vsyncpa [#allocation6 + $0x1], 1 }

</bundles_post_ra>
